<compile_context>
chip_gen: v7x
topology: tpu7x:2x2x1
jax: 0.10.0
libtpu: 0.0.40
codegen_flags: <defaults>
</compile_context>

<pallas_src>
import functools

import jax
import jax.numpy as jnp
from jax.experimental import pallas as pl
from jax.experimental.pallas import tpu as pltpu


def critic_kernel(state_ref, action_ref, w1_ref, w2_ref, vec_ref, out_ref,
                  *, h0, h1):
    state = state_ref[...]          # [TB, S]
    action = action_ref[...]        # [TB, A]

    # Packed vector operands (static slices, start at col 0 -> no lane shifts).
    b1 = vec_ref[0:1, :h0]          # [1, H0]
    b2 = vec_ref[1:2, :h1]          # [1, H1]
    w3_row = vec_ref[2:3, :h1]      # [1, H1]  (W3 column stored as a row)
    b3 = vec_ref[3:4, 0:1]          # [1, 1]

    # Layer 1: relu(state @ W1 + b1)
    x1 = jnp.dot(state, w1_ref[...], preferred_element_type=jnp.float32) + b1
    x1 = jnp.maximum(x1, 0.0)

    # Layer 2: relu(cat([x1, action]) @ W2 + b2)
    # == relu(x1 @ W2[:h0] + action @ W2[h0:] + b2)  -- exact, no in-kernel concat.
    w2h = w2_ref[:h0, :]            # [H0, H1]
    w2a = w2_ref[h0:, :]            # [A,  H1]
    x2 = (jnp.dot(x1, w2h, preferred_element_type=jnp.float32)
          + jnp.dot(action, w2a, preferred_element_type=jnp.float32)
          + b2)
    x2 = jnp.maximum(x2, 0.0)

    # Output layer: N=1 matmul replaced by VPU multiply + lane reduction.
    out_ref[...] = jnp.sum(x2 * w3_row, axis=-1, keepdims=True) + b3


def _pick_batch_tile(batch):
    for tb in (1024, 512, 256, 128, 64, 32, 16, 8):
        if batch >= tb and batch % tb == 0:
            return tb
    return batch  # small / ragged batch: single block covering everything


def critic_forward(state, action, params, *, batch_tile=None):
    """Fused Critic forward pass as a single batch-tiled Pallas kernel."""
    w1, w2, vec = params
    B, S = state.shape
    A = action.shape[1]
    H0 = w1.shape[1]
    H1 = w2.shape[1]
    P = vec.shape[1]
    assert w2.shape[0] == H0 + A

    TB = batch_tile if batch_tile is not None else _pick_batch_tile(B)
    assert B % TB == 0, (B, TB)

    kernel = functools.partial(critic_kernel, h0=H0, h1=H1)

    return pl.pallas_call(
        kernel,
        out_shape=jax.ShapeDtypeStruct((B, 1), jnp.float32),
        grid_spec=pltpu.PrefetchScalarGridSpec(
            num_scalar_prefetch=0,
            grid=(B // TB,),
            in_specs=[
                pl.BlockSpec((TB, S), lambda i: (i, 0)),        # state tile
                pl.BlockSpec((TB, A), lambda i: (i, 0)),        # action tile
                pl.BlockSpec((S, H0), lambda i: (0, 0)),        # W1 (resident)
                pl.BlockSpec((H0 + A, H1), lambda i: (0, 0)),   # W2 (resident)
                pl.BlockSpec((4, P), lambda i: (0, 0)),         # b1/b2/w3/b3 pack
            ],
            out_specs=pl.BlockSpec((TB, 1), lambda i: (i, 0)),
        ),
        compiler_params=pltpu.CompilerParams(
            dimension_semantics=("parallel",)),
    )(state, action, w1, w2, vec)


def init_params(key, state_size, action_size, hidden_layers):
    """Deterministic synthetic parameter init (PyTorch-Linear-style uniform)."""
    h0, h1 = hidden_layers[0], hidden_layers[1]
    ks = jax.random.split(key, 6)

    def uinit(k, shape, fan_in):
        bound = 1.0 / jnp.sqrt(jnp.float32(fan_in))
        return jax.random.uniform(k, shape, jnp.float32, -bound, bound)

    w1 = uinit(ks[0], (state_size, h0), state_size)                 # [S, H0]
    b1 = uinit(ks[1], (h0,), state_size)                            # [H0]
    w2 = uinit(ks[2], (h0 + action_size, h1), h0 + action_size)     # [H0+A, H1]
    b2 = uinit(ks[3], (h1,), h0 + action_size)                      # [H1]
    w3 = uinit(ks[4], (h1, 1), h1)                                  # [H1, 1]
    b3 = uinit(ks[5], (1,), h1)                                     # [1]

    # Pack b1 / b2 / W3 (as a row) / b3 into one small operand.
    pmax = max(h0, h1)
    vec = jnp.zeros((4, pmax), jnp.float32)
    vec = vec.at[0, :h0].set(b1)
    vec = vec.at[1, :h1].set(b2)
    vec = vec.at[2, :h1].set(w3[:, 0])
    vec = vec.at[3, 0].set(b3[0])

    packed = (w1, w2, vec)
    raw = (w1, b1.reshape(1, h0), w2, b2.reshape(1, h1), w3, b3.reshape(1, 1))
    return packed, raw


def critic_ref(state, action, raw_params):
    """Plain-JAX reference mirroring the PyTorch forward exactly."""
    w1, b1, w2, b2, w3, b3 = raw_params
    x = jax.nn.relu(state @ w1 + b1)
    x = jnp.concatenate([x, action], axis=1)
    x = jax.nn.relu(x @ w2 + b2)
    return x @ w3 + b3


if __name__ == "__main__":
    # Small shapes consistent with the module (hidden_layers is a ctor arg).
    B = 8
    STATE_SIZE = 32
    ACTION_SIZE = 16
    HIDDEN = [64, 32]

    key = jax.random.PRNGKey(0)
    k_state, k_action, k_params = jax.random.split(key, 3)

    state = jax.random.normal(k_state, (B, STATE_SIZE), jnp.float32)
    action = jax.random.normal(k_action, (B, ACTION_SIZE), jnp.float32)

    params, raw_params = init_params(k_params, STATE_SIZE, ACTION_SIZE, HIDDEN)

    out = critic_forward(state, action, params)
    out = jax.block_until_ready(out)

    ref = critic_ref(state, action, raw_params)
    assert out.shape == (B, 1), out.shape
    assert jnp.allclose(out, ref, atol=1e-4, rtol=1e-4), "mismatch vs reference"

    print("KERNEL_OK")
</pallas_src>

<mosaic_0001>
module attributes {stable_mosaic.version = 11 : i64} {
  func.func @critic_kernel(%arg0: i32, %arg1: memref<8x32xf32, #tpu.memory_space<vmem>>, %arg2: memref<8x16xf32, #tpu.memory_space<vmem>>, %arg3: memref<32x64xf32, #tpu.memory_space<vmem>>, %arg4: memref<80x32xf32, #tpu.memory_space<vmem>>, %arg5: memref<4x64xf32, #tpu.memory_space<vmem>>, %arg6: memref<8x1xf32, #tpu.memory_space<vmem>>) attributes {dimension_semantics = [#tpu.dimension_semantics<parallel>], iteration_bounds = array<i64: 1>, scalar_prefetch = 0 : i64, scratch_operands = 0 : i64, tpu.core_type = #tpu.core_type<tc>, window_params = [{transform_indices = @transform_0, window_bounds = array<i64: 8, 32>}, {transform_indices = @transform_1, window_bounds = array<i64: 8, 16>}, {pipeline_mode = #tpu.pipeline_mode<synchronous>, transform_indices = @transform_2, window_bounds = array<i64: 32, 64>}, {pipeline_mode = #tpu.pipeline_mode<synchronous>, transform_indices = @transform_3, window_bounds = array<i64: 80, 32>}, {pipeline_mode = #tpu.pipeline_mode<synchronous>, transform_indices = @transform_4, window_bounds = array<i64: 4, 64>}, {transform_indices = @transform_5, window_bounds = array<i64: 8, 1>}]} {
    %c0 = arith.constant 0 : index
    %c0_0 = arith.constant 0 : index
    %0 = vector.load %arg1[%c0, %c0_0] : memref<8x32xf32, #tpu.memory_space<vmem>>, vector<8x32xf32>
    %c0_1 = arith.constant 0 : index
    %c0_2 = arith.constant 0 : index
    %1 = vector.load %arg2[%c0_1, %c0_2] : memref<8x16xf32, #tpu.memory_space<vmem>>, vector<8x16xf32>
    %c0_3 = arith.constant 0 : index
    %c0_4 = arith.constant 0 : index
    %2 = vector.load %arg5[%c0_3, %c0_4] : memref<4x64xf32, #tpu.memory_space<vmem>>, vector<1x64xf32>
    %c1 = arith.constant 1 : index
    %c0_5 = arith.constant 0 : index
    %3 = vector.load %arg5[%c1, %c0_5] : memref<4x64xf32, #tpu.memory_space<vmem>>, vector<1x32xf32>
    %c2 = arith.constant 2 : index
    %c0_6 = arith.constant 0 : index
    %4 = vector.load %arg5[%c2, %c0_6] : memref<4x64xf32, #tpu.memory_space<vmem>>, vector<1x32xf32>
    %c3 = arith.constant 3 : index
    %c0_7 = arith.constant 0 : index
    %5 = vector.load %arg5[%c3, %c0_7] : memref<4x64xf32, #tpu.memory_space<vmem>>, vector<1x1xf32>
    %c0_8 = arith.constant 0 : index
    %c0_9 = arith.constant 0 : index
    %6 = vector.load %arg3[%c0_8, %c0_9] : memref<32x64xf32, #tpu.memory_space<vmem>>, vector<32x64xf32>
    %cst = arith.constant dense<0.000000e+00> : vector<8x64xf32>
    %7 = tpu.matmul %0, %6, %cst {dimension_numbers = #tpu.dot_dimension_numbers<[1], [0], [0], [1], [0, 0, 1, 1], [], []>} : vector<8x32xf32>, vector<32x64xf32>, vector<8x64xf32> -> vector<8x64xf32>
    %8 = vector.broadcast %2 : vector<1x64xf32> to vector<8x64xf32>
    %9 = arith.addf %7, %8 : vector<8x64xf32>
    %cst_10 = arith.constant 0.000000e+00 : f32
    %10 = vector.broadcast %cst_10 : f32 to vector<8x64xf32>
    %11 = arith.maximumf %9, %10 : vector<8x64xf32>
    %c0_11 = arith.constant 0 : index
    %c0_12 = arith.constant 0 : index
    %12 = vector.load %arg4[%c0_11, %c0_12] : memref<80x32xf32, #tpu.memory_space<vmem>>, vector<64x32xf32>
    %c64 = arith.constant 64 : index
    %c0_13 = arith.constant 0 : index
    %13 = vector.load %arg4[%c64, %c0_13] : memref<80x32xf32, #tpu.memory_space<vmem>>, vector<16x32xf32>
    %cst_14 = arith.constant dense<0.000000e+00> : vector<8x32xf32>
    %14 = tpu.matmul %11, %12, %cst_14 {dimension_numbers = #tpu.dot_dimension_numbers<[1], [0], [0], [1], [0, 0, 1, 1], [], []>} : vector<8x64xf32>, vector<64x32xf32>, vector<8x32xf32> -> vector<8x32xf32>
    %cst_15 = arith.constant dense<0.000000e+00> : vector<8x32xf32>
    %15 = tpu.matmul %1, %13, %cst_15 {dimension_numbers = #tpu.dot_dimension_numbers<[1], [0], [0], [1], [0, 0, 1, 1], [], []>} : vector<8x16xf32>, vector<16x32xf32>, vector<8x32xf32> -> vector<8x32xf32>
    %16 = arith.addf %14, %15 : vector<8x32xf32>
    %17 = vector.broadcast %3 : vector<1x32xf32> to vector<8x32xf32>
    %18 = arith.addf %16, %17 : vector<8x32xf32>
    %cst_16 = arith.constant 0.000000e+00 : f32
    %19 = vector.broadcast %cst_16 : f32 to vector<8x32xf32>
    %20 = arith.maximumf %18, %19 : vector<8x32xf32>
    %21 = vector.broadcast %4 : vector<1x32xf32> to vector<8x32xf32>
    %22 = arith.mulf %20, %21 : vector<8x32xf32>
    %cst_17 = arith.constant dense<0.000000e+00> : vector<8xf32>
    %23 = vector.multi_reduction <add>, %22, %cst_17 [1] : vector<8x32xf32> to vector<8xf32>
    %24 = vector.shape_cast %23 : vector<8xf32> to vector<8x1xf32>
    %25 = vector.broadcast %5 : vector<1x1xf32> to vector<8x1xf32>
    %26 = arith.addf %24, %25 : vector<8x1xf32>
    %c0_18 = arith.constant 0 : index
    %c0_19 = arith.constant 0 : index
    %27 = vector.load %arg6[%c0_18, %c0_19] : memref<8x1xf32, #tpu.memory_space<vmem>>, vector<8x1xf32>
    tpu.vector_store %arg6[%c0_18, %c0_19], %26 {strides = array<i32>} : memref<8x1xf32, #tpu.memory_space<vmem>>, vector<8x1xf32>,
    return
  }
  func.func @transform_0(%arg0: i32) -> (i32, i32) {
    %c0_i32 = arith.constant 0 : i32
    %c0_i32_0 = arith.constant 0 : i32
    return %arg0, %c0_i32 : i32, i32
  }
  func.func @transform_1(%arg0: i32) -> (i32, i32) {
    %c0_i32 = arith.constant 0 : i32
    %c0_i32_0 = arith.constant 0 : i32
    return %arg0, %c0_i32 : i32, i32
  }
  func.func @transform_2(%arg0: i32) -> (i32, i32) {
    %c0_i32 = arith.constant 0 : i32
    %c0_i32_0 = arith.constant 0 : i32
    %c0_i32_1 = arith.constant 0 : i32
    return %c0_i32, %c0_i32_0 : i32, i32
  }
  func.func @transform_3(%arg0: i32) -> (i32, i32) {
    %c0_i32 = arith.constant 0 : i32
    %c0_i32_0 = arith.constant 0 : i32
    %c0_i32_1 = arith.constant 0 : i32
    return %c0_i32, %c0_i32_0 : i32, i32
  }
  func.func @transform_4(%arg0: i32) -> (i32, i32) {
    %c0_i32 = arith.constant 0 : i32
    %c0_i32_0 = arith.constant 0 : i32
    %c0_i32_1 = arith.constant 0 : i32
    return %c0_i32, %c0_i32_0 : i32, i32
  }
  func.func @transform_5(%arg0: i32) -> (i32, i32) {
    %c0_i32 = arith.constant 0 : i32
    %c0_i32_0 = arith.constant 0 : i32
    return %arg0, %c0_i32 : i32, i32
  }
}

</mosaic_0001>

<bundles_post_ra>
// kernel: tpu_custom_call.1
= control target key start
LH: loop header
LB: loop body
LE: loop exit
PB: predicated region body
PF: predicated region fallthrough
CT: control target
= control target key end

     0   :  { %v377_v0 = vmov 0.0|0.0   ;;  %vm378_vm0 = vmmov 0   ;;  %v379_v4 = vmov 0.0   ;;  %vm34_vm1 = vcmask 261120   ;;  %s478_s2 = inlined_call_operand.vmem [shape: f32[32,64], index: 2, kind: input, shape index: {}]   ;;  %s479_s3 = inlined_call_operand.vmem [shape: f32[80,32], index: 3, kind: input, shape index: {}]   ;;  %s480_s0 = inlined_call_operand.vmem [shape: f32[8,32], index: 0, kind: input, shape index: {}]   ;;  %s481_s1 = inlined_call_operand.vmem [shape: f32[8,16], index: 1, kind: input, shape index: {}]   ;;  %s482_s4 = inlined_call_operand.vmem [shape: f32[4,64], index: 4, kind: input, shape index: {}]   ;;  %s483_s5 = inlined_call_operand.vmem [shape: f32[8,1], index: 5, kind: output, shape index: {}]  }
   0x1   :  { %353 = vmatprep.subr.bf16.mxu0 %v377_v0  ;;  %v26_v1 = vld [vmem:[%s478_s2] sm:$0xff]  ;;  %v27_v2 = vld [vmem:[%s478_s2 + $0x8] sm:$0xff]  ;;  %v28_v3 = vld [vmem:[%s478_s2 + $0x10] sm:$0xff]  ;;  %324 = vmatprep.mubr.msk.f32.mxu0 %vm378_vm0, %v379_v4  ;;  %vm119_vm2 = vcmask 130048   ;;  %vm193_vm3 = vcmask 523264   ;;  %vm286_vm4 = vcmask 7168  }
   0x2   :  { %v354_v5 = vpack.c.bf16 %v27_v2, %v26_v1  ;;  %v29_v6 = vld [vmem:[%s478_s2 + $0x18] sm:$0xff]  ;;  %362 = vmatprep.subr.bf16.mxu1 %v377_v0  ;;  %v109_v7 = vld [vmem:[%s479_s3] sm:$0xff]  ;;  %350 = vmatprep.mubr.msk.f32.mxu1 %vm378_vm0, %v379_v4  ;;  %v110_v8 = vld [vmem:[%s479_s3 + $0x8] sm:$0xff] }
   0x3   :  { %v111_v9 = vld [vmem:[%s479_s3 + $0x10] sm:$0xff]  ;;  %v112_v10 = vld [vmem:[%s479_s3 + $0x18] sm:$0xff]  ;;  %v357_v11 = vpack.c.bf16 %v29_v6, %v28_v3  ;;  %v363_v12 = vpack.c.bf16 %v110_v8, %v109_v7  ;;  %v113_v14 = vld [vmem:[%s479_s3 + $0x20] sm:$0xff] }
   0x4   :  { %355 = vmatpush3.bf16.msra.mxu0 %v354_v5  ;;  %v366_v13 = vpack.c.bf16 %v112_v10, %v111_v9  ;;  %v114_v15 = vld [vmem:[%s479_s3 + $0x28] sm:$0xff]  ;;  %v20_v16 = vld [vmem:[%s480_s0] sm:$0xff]  ;;  %v115_v21 = vld [vmem:[%s479_s3 + $0x30] sm:$0xff] }
   0x5   :  { %356 = vmatprep.subr.bf16.mxu0 %v377_v0  ;;  %364 = vmatpush3.bf16.msra.mxu1 %v363_v12  ;;  %v369_v17 = vpack.c.bf16 %v114_v15, %v113_v14  ;;  %v117_v18 = vld [vmem:[%s479_s3 + $0x40] sm:$0xff]  ;;  %v118_v19 = vld [vmem:[%s479_s3 + $0x48] sm:$0xff]  ;;  %v116_v22 = vld [vmem:[%s479_s3 + $0x38] sm:$0xff] }
   0x6   :  { %365 = vmatprep.subr.bf16.mxu1 %v377_v0  ;;  %v360_v20 = vpack.c.bf16 %v118_v19, %v117_v18  ;;  %v372_v23 = vpack.c.bf16 %v116_v22, %v115_v21  ;;  %v21_v24 = vld [vmem:[%s481_s1] sm:$0xff] }
   0x7   :  { %v292_v25 = vld [vmem:[%s482_s4] ss:$0 sm:$0xff]  ;;  %v296_v32 = vld [vmem:[%s482_s4 + $0x1] ss:$0 sm:$0xff]  ;;  %v297_v37 = vld [vmem:[%s482_s4 + $0x2] ss:$0 sm:$0xff] }
   0x8   :  { %358 = vmatpush3.bf16.msra.mxu0 %v357_v11  ;;  %v298_v41 = vld [vmem:[%s482_s4 + $0x3] ss:$0 sm:$0xff] }
   0x9   :  { %359 = vmatprep.subr.bf16.mxu0 %v377_v0  ;;  %367 = vmatpush3.bf16.msra.mxu1 %v366_v13 }
   0xa   :  { %368 = vmatprep.subr.bf16.mxu1 %v377_v0 }
   0xb   :  { %325 = vmatmul.mubr.msk.f32.vlgmr.msra.gmra.mrb[0].mxu0 %vm34_vm1, %v20_v16 }
   0xc   :  { %331 = vmatprep.mubr.msk.f32.mxu0 %vm378_vm0, %v379_v4  ;;  %361 = vmatpush3.bf16.msra.mxu0 %v360_v20 }
   0xd   :  { %370 = vmatpush3.bf16.msra.mxu1 %v369_v17 }
   0xe   :  { %371 = vmatprep.subr.bf16.mxu1 %v377_v0 }
   0xf   :  { %332 = vmatmul.mubr.msk.f32.vlgmr.msra.gmra.mrb[2].mxu0 %vm119_vm2, %v21_v24 }
  0x11   :  { %373 = vmatpush3.bf16.msra.mxu1 %v372_v23 }
  0xde   :  { %v104_v26 = vpop.f32.mrb[0].mxu0 }
  0xdf   :  { %v105_v27 = vadd.f32 %v292_v25, %v104_v26  ;;  %v326_v28 = vpop.f32.mrb[1].mxu0 }
  0xe1   :  { %v108_v29 = vmax.f32 %v105_v27, 0.0 }
  0xe2   :  { %v189_v30 = vpop.f32.mrb[2].mxu0 }
  0xe3   :  { %351 = vmatmul.mubr.msk.f32.vlgmr.msra.gmra.mrb[0].mxu1 %vm193_vm3, %v108_v29  ;;  %v333_v31 = vpop.f32.mrb[3].mxu0 }
 0x1b6   :  { %v263_v33 = vpop.f32.mrb[0].mxu1 }
 0x1b7   :  { %v264_v34 = vadd.f32 %v263_v33, %v189_v30  ;;  %v352_v35 = vpop.f32.mrb[1].mxu1 }
 0x1b9   :  { %v271_v36 = vadd.f32 %v296_v32, %v264_v34 }
 0x1bb   :  { %v272_v38 = vmax.f32 %v271_v36, 0.0 }
 0x1bd   :  { %v277_v39 = vmul.f32 %v297_v37, %v272_v38 }
 0x1bf   :  { %v278_v40 = vsel %vm34_vm1, %v277_v39, 0.0 }
 0x1c0   :  { %279 = vadd.xlane.f32.xlu0 %v278_v40 }
 0x24d   :  { %v280_v42 = vpop.xlane.xlu0 %279 }
 0x24e   :  { %v285_v43 = vadd.f32 %v298_v41, %v280_v42 }
 0x250   :  { %287 = vst.msk [vmem:[%s483_s5] sm:$0xff] %vm286_vm4, %v285_v43 }

</bundles_post_ra>
